<compile_context>
chip_gen: v7x
topology: tpu7x:2x2x1
jax: 0.10.0
libtpu: 0.0.40
codegen_flags: <defaults>
</compile_context>

<pallas_src>
import functools

import jax
import jax.numpy as jnp
from jax.experimental import pallas as pl
from jax.experimental.pallas import tpu as pltpu

_LANE = 128


def _round_up(v, m):
    return (v + m - 1) // m * m


def _mlp_kernel(n_layers, drop_p, tile_n, seeds_ref, x_ref, *args):
    """Fused MLP body.

    seeds_ref : [n_layers] int32 (SMEM, scalar-prefetch)
    x_ref     : [tile_n, D0_pad]               VMEM
    args      : w0, b0, ..., w_{L-1}, b_{L-1}, o_ref
                w_j : [Dj_pad, Dj+1_pad], b_j : [1, Dj+1_pad], all VMEM
    """
    w_refs = args[0:2 * n_layers:2]
    b_refs = args[1:2 * n_layers:2]
    o_ref = args[2 * n_layers]

    h = x_ref[...].astype(jnp.float32)
    row0 = pl.program_id(0) * tile_n  # global row offset of this tile

    for j in range(n_layers):
        w = w_refs[j][...]
        b = b_refs[j][...]
        y = jnp.dot(h.astype(w.dtype), w, preferred_element_type=jnp.float32)
        y = y + b.astype(jnp.float32)

        if j < n_layers - 1:
            y = jnp.maximum(y, 0.0)
            if drop_p > 0.0:
                # Portable counter-based PRNG: murmur3 finalizer over
                # (seed_j, global_row, col).  Tiling-invariant, distinct per
                # layer (independent seeds) and per row tile (global row id).
                thresh = jnp.uint32(min(int(round(drop_p * (2 ** 32))), 0xFFFFFFFF))
                rows = (jax.lax.broadcasted_iota(jnp.int32, y.shape, 0)
                        + row0).astype(jnp.uint32)
                cols = jax.lax.broadcasted_iota(jnp.int32, y.shape, 1).astype(jnp.uint32)
                seed_u = seeds_ref[j].astype(jnp.uint32)
                z = ((rows * jnp.uint32(0x9E3779B1))
                     ^ (cols * jnp.uint32(0x85EBCA77))
                     ^ (seed_u * jnp.uint32(0xC2B2AE3D)))
                z = (z ^ (z >> 16)) * jnp.uint32(0x85EBCA6B)
                z = (z ^ (z >> 13)) * jnp.uint32(0xC2B2AE35)
                z = z ^ (z >> 16)
                keep = z >= thresh  # P(keep) = 1 - p
                # 1/(1-p) rescale is pre-folded into the next layer's weights.
                y = jnp.where(keep, y, jnp.float32(0.0))
        h = y

    o_ref[...] = h.astype(o_ref.dtype)


@functools.partial(jax.jit, static_argnames=("drop_p", "out_dim", "tile_cap"))
def _mlp_forward(x, params, seeds, *, drop_p, out_dim, tile_cap=512):
    n, d_in = x.shape
    n_layers = len(params)
    d_in_pad = params[0][0].shape[0]
    d_out_pad = params[-1][0].shape[1]

    # Row tile: biggest multiple-of-8 tile up to tile_cap; pad N to a multiple.
    tile_n = min(int(tile_cap), _round_up(max(n, 1), 8))
    n_pad = _round_up(n, tile_n)

    x_pad = jnp.pad(x.astype(jnp.float32),
                    ((0, n_pad - n), (0, d_in_pad - d_in)))

    in_specs = [pl.BlockSpec((tile_n, d_in_pad), lambda i, s: (i, 0))]
    flat_params = []
    for (w, b) in params:
        di, do = w.shape
        in_specs.append(pl.BlockSpec((di, do), lambda i, s: (0, 0)))
        in_specs.append(pl.BlockSpec((1, do), lambda i, s: (0, 0)))
        flat_params += [w, b]

    out_specs = pl.BlockSpec((tile_n, d_out_pad), lambda i, s: (i, 0))

    kernel = functools.partial(_mlp_kernel, n_layers, float(drop_p), tile_n)

    out = pl.pallas_call(
        kernel,
        out_shape=jax.ShapeDtypeStruct((n_pad, d_out_pad), jnp.float32),
        grid_spec=pltpu.PrefetchScalarGridSpec(
            num_scalar_prefetch=1,
            grid=(n_pad // tile_n,),
            in_specs=in_specs,
            out_specs=out_specs,
        ),
        compiler_params=pltpu.CompilerParams(
            dimension_semantics=("parallel",),
        ),
    )(seeds, x_pad, *flat_params)

    return out[:n, :out_dim]


class RelationClassifier2Pallas:
    """JAX/Pallas port of relation_classifier_2."""

    def __init__(self, dimensions, dropout, key, flag=1, param_dtype=jnp.float32):
        self.dimensions = list(dimensions)
        self.dropout = float(dropout)
        self.flag = flag
        self.params = []

        n_layers = len(self.dimensions) - 1
        # Fold the dropout 1/(1-p) rescale of the previous layer's output into
        # this layer's weights (mathematically identical to in-kernel scaling).
        scale = 1.0 / (1.0 - self.dropout) if self.dropout > 0.0 else 1.0

        for i in range(n_layers):
            d_in, d_out = self.dimensions[i], self.dimensions[i + 1]
            key, kw, kb = jax.random.split(key, 3)
            # torch.nn.Linear default init: U(-1/sqrt(fan_in), 1/sqrt(fan_in)).
            bound = 1.0 / (d_in ** 0.5)
            w = jax.random.uniform(kw, (d_in, d_out), jnp.float32, -bound, bound)
            b = jax.random.uniform(kb, (1, d_out), jnp.float32, -bound, bound)
            if i > 0:
                w = w * scale
            # Zero-pad feature dims to lane (128) multiples -> lane-dense
            # matmuls/stores inside the kernel.
            d_in_p = _round_up(d_in, _LANE)
            d_out_p = _round_up(d_out, _LANE)
            w = jnp.pad(w, ((0, d_in_p - d_in), (0, d_out_p - d_out))).astype(param_dtype)
            b = jnp.pad(b, ((0, 0), (0, d_out_p - d_out))).astype(param_dtype)
            self.params.append((w, b))

    def __call__(self, x, dropout_key, tile_cap=512):
        n_layers = len(self.params)
        # One host-side dispatch for all per-layer dropout seeds.
        seeds = jax.random.randint(dropout_key, (max(n_layers, 1),),
                                   0, 2 ** 31 - 1, jnp.int32)
        out = _mlp_forward(x, self.params, seeds,
                           drop_p=self.dropout,
                           out_dim=self.dimensions[-1],
                           tile_cap=int(tile_cap))
        if self.flag:
            out = out  # identity branch, kept for semantic parity
        return out


if __name__ == "__main__":
    key = jax.random.PRNGKey(0)
    k_params, k_input, k_drop = jax.random.split(key, 3)

    # dimensions = [input, hidden..., output]
    dimensions = [32, 64, 48, 8]
    dropout_p = 0.1
    batch = 16

    model = RelationClassifier2Pallas(dimensions, dropout_p, k_params, flag=1)

    x = jax.random.normal(k_input, (batch, dimensions[0]), jnp.float32)
    out = model(x, k_drop)
    out = jax.block_until_ready(out)

    assert out.shape == (batch, dimensions[-1])
    assert out.dtype == jnp.float32
    assert bool(jnp.all(jnp.isfinite(out)))
    print("KERNEL_OK")
</pallas_src>

<mosaic_0001>
module attributes {stable_mosaic.version = 11 : i64} {
  func.func @_mlp_kernel(%arg0: i32, %arg1: memref<3xi32, #tpu.memory_space<smem>>, %arg2: memref<16x128xf32, #tpu.memory_space<vmem>>, %arg3: memref<128x128xf32, #tpu.memory_space<vmem>>, %arg4: memref<1x128xf32, #tpu.memory_space<vmem>>, %arg5: memref<128x128xf32, #tpu.memory_space<vmem>>, %arg6: memref<1x128xf32, #tpu.memory_space<vmem>>, %arg7: memref<128x128xf32, #tpu.memory_space<vmem>>, %arg8: memref<1x128xf32, #tpu.memory_space<vmem>>, %arg9: memref<16x128xf32, #tpu.memory_space<vmem>>) attributes {dimension_semantics = [#tpu.dimension_semantics<parallel>], iteration_bounds = array<i64: 1>, scalar_prefetch = 1 : i64, scratch_operands = 0 : i64, tpu.core_type = #tpu.core_type<tc>, window_params = [{transform_indices = @transform_0, window_bounds = array<i64: 16, 128>}, {pipeline_mode = #tpu.pipeline_mode<synchronous>, transform_indices = @transform_1, window_bounds = array<i64: 128, 128>}, {pipeline_mode = #tpu.pipeline_mode<synchronous>, transform_indices = @transform_2, window_bounds = array<i64: 1, 128>}, {pipeline_mode = #tpu.pipeline_mode<synchronous>, transform_indices = @transform_3, window_bounds = array<i64: 128, 128>}, {pipeline_mode = #tpu.pipeline_mode<synchronous>, transform_indices = @transform_4, window_bounds = array<i64: 1, 128>}, {pipeline_mode = #tpu.pipeline_mode<synchronous>, transform_indices = @transform_5, window_bounds = array<i64: 128, 128>}, {pipeline_mode = #tpu.pipeline_mode<synchronous>, transform_indices = @transform_6, window_bounds = array<i64: 1, 128>}, {transform_indices = @transform_7, window_bounds = array<i64: 16, 128>}]} {
    %c0 = arith.constant 0 : index
    %c0_0 = arith.constant 0 : index
    %0 = vector.load %arg2[%c0, %c0_0] : memref<16x128xf32, #tpu.memory_space<vmem>>, vector<16x128xf32>
    %c16_i32 = arith.constant 16 : i32
    %1 = arith.muli %arg0, %c16_i32 : i32
    %c0_1 = arith.constant 0 : index
    %c0_2 = arith.constant 0 : index
    %2 = vector.load %arg3[%c0_1, %c0_2] : memref<128x128xf32, #tpu.memory_space<vmem>>, vector<128x128xf32>
    %c0_3 = arith.constant 0 : index
    %c0_4 = arith.constant 0 : index
    %3 = vector.load %arg4[%c0_3, %c0_4] : memref<1x128xf32, #tpu.memory_space<vmem>>, vector<1x128xf32>
    %cst = arith.constant dense<0.000000e+00> : vector<16x128xf32>
    %4 = tpu.matmul %0, %2, %cst {dimension_numbers = #tpu.dot_dimension_numbers<[1], [0], [0], [1], [0, 0, 1, 1], [], []>} : vector<16x128xf32>, vector<128x128xf32>, vector<16x128xf32> -> vector<16x128xf32>
    %5 = vector.broadcast %3 : vector<1x128xf32> to vector<16x128xf32>
    %6 = arith.addf %4, %5 : vector<16x128xf32>
    %cst_5 = arith.constant 0.000000e+00 : f32
    %7 = vector.broadcast %cst_5 : f32 to vector<16x128xf32>
    %8 = arith.maximumf %6, %7 : vector<16x128xf32>
    %9 = tpu.iota {dimensions = array<i32: 0>} : vector<16x128xi32>
    %10 = vector.broadcast %1 : i32 to vector<16x128xi32>
    %11 = arith.addi %9, %10 : vector<16x128xi32>
    %12 = tpu.iota {dimensions = array<i32: 1>} : vector<16x128xi32>
    %c0_6 = arith.constant 0 : index
    %13 = memref.load %arg1[%c0_6] : memref<3xi32, #tpu.memory_space<smem>>
    %c-1640531535_i32 = arith.constant -1640531535 : i32
    %14 = vector.broadcast %c-1640531535_i32 : i32 to vector<16x128xi32>
    %15 = arith.muli %11, %14 : vector<16x128xi32>
    %c-2048144777_i32 = arith.constant -2048144777 : i32
    %16 = vector.broadcast %c-2048144777_i32 : i32 to vector<16x128xi32>
    %17 = arith.muli %12, %16 : vector<16x128xi32>
    %18 = arith.xori %15, %17 : vector<16x128xi32>
    %c-1028477379_i32 = arith.constant -1028477379 : i32
    %19 = arith.muli %13, %c-1028477379_i32 : i32
    %20 = vector.broadcast %19 : i32 to vector<16x128xi32>
    %21 = arith.xori %18, %20 : vector<16x128xi32>
    %c16_i32_7 = arith.constant 16 : i32
    %22 = vector.broadcast %c16_i32_7 : i32 to vector<16x128xi32>
    %23 = arith.shrui %21, %22 : vector<16x128xi32>
    %24 = arith.xori %21, %23 : vector<16x128xi32>
    %c-2048144789_i32 = arith.constant -2048144789 : i32
    %25 = vector.broadcast %c-2048144789_i32 : i32 to vector<16x128xi32>
    %26 = arith.muli %24, %25 : vector<16x128xi32>
    %c13_i32 = arith.constant 13 : i32
    %27 = vector.broadcast %c13_i32 : i32 to vector<16x128xi32>
    %28 = arith.shrui %26, %27 : vector<16x128xi32>
    %29 = arith.xori %26, %28 : vector<16x128xi32>
    %c-1028477387_i32 = arith.constant -1028477387 : i32
    %30 = vector.broadcast %c-1028477387_i32 : i32 to vector<16x128xi32>
    %31 = arith.muli %29, %30 : vector<16x128xi32>
    %c16_i32_8 = arith.constant 16 : i32
    %32 = vector.broadcast %c16_i32_8 : i32 to vector<16x128xi32>
    %33 = arith.shrui %31, %32 : vector<16x128xi32>
    %34 = arith.xori %31, %33 : vector<16x128xi32>
    %c429496730_i32 = arith.constant 429496730 : i32
    %35 = vector.broadcast %c429496730_i32 : i32 to vector<16x128xi32>
    %36 = arith.cmpi uge, %34, %35 : vector<16x128xi32>
    %cst_9 = arith.constant 0.000000e+00 : f32
    %37 = vector.broadcast %cst_9 : f32 to vector<16x128xf32>
    %38 = arith.select %36, %8, %37 : vector<16x128xi1>, vector<16x128xf32>
    %c0_10 = arith.constant 0 : index
    %c0_11 = arith.constant 0 : index
    %39 = vector.load %arg5[%c0_10, %c0_11] : memref<128x128xf32, #tpu.memory_space<vmem>>, vector<128x128xf32>
    %c0_12 = arith.constant 0 : index
    %c0_13 = arith.constant 0 : index
    %40 = vector.load %arg6[%c0_12, %c0_13] : memref<1x128xf32, #tpu.memory_space<vmem>>, vector<1x128xf32>
    %cst_14 = arith.constant dense<0.000000e+00> : vector<16x128xf32>
    %41 = tpu.matmul %38, %39, %cst_14 {dimension_numbers = #tpu.dot_dimension_numbers<[1], [0], [0], [1], [0, 0, 1, 1], [], []>} : vector<16x128xf32>, vector<128x128xf32>, vector<16x128xf32> -> vector<16x128xf32>
    %42 = vector.broadcast %40 : vector<1x128xf32> to vector<16x128xf32>
    %43 = arith.addf %41, %42 : vector<16x128xf32>
    %cst_15 = arith.constant 0.000000e+00 : f32
    %44 = vector.broadcast %cst_15 : f32 to vector<16x128xf32>
    %45 = arith.maximumf %43, %44 : vector<16x128xf32>
    %46 = tpu.iota {dimensions = array<i32: 0>} : vector<16x128xi32>
    %47 = vector.broadcast %1 : i32 to vector<16x128xi32>
    %48 = arith.addi %46, %47 : vector<16x128xi32>
    %49 = tpu.iota {dimensions = array<i32: 1>} : vector<16x128xi32>
    %c1 = arith.constant 1 : index
    %50 = memref.load %arg1[%c1] : memref<3xi32, #tpu.memory_space<smem>>
    %c-1640531535_i32_16 = arith.constant -1640531535 : i32
    %51 = vector.broadcast %c-1640531535_i32_16 : i32 to vector<16x128xi32>
    %52 = arith.muli %48, %51 : vector<16x128xi32>
    %c-2048144777_i32_17 = arith.constant -2048144777 : i32
    %53 = vector.broadcast %c-2048144777_i32_17 : i32 to vector<16x128xi32>
    %54 = arith.muli %49, %53 : vector<16x128xi32>
    %55 = arith.xori %52, %54 : vector<16x128xi32>
    %c-1028477379_i32_18 = arith.constant -1028477379 : i32
    %56 = arith.muli %50, %c-1028477379_i32_18 : i32
    %57 = vector.broadcast %56 : i32 to vector<16x128xi32>
    %58 = arith.xori %55, %57 : vector<16x128xi32>
    %c16_i32_19 = arith.constant 16 : i32
    %59 = vector.broadcast %c16_i32_19 : i32 to vector<16x128xi32>
    %60 = arith.shrui %58, %59 : vector<16x128xi32>
    %61 = arith.xori %58, %60 : vector<16x128xi32>
    %c-2048144789_i32_20 = arith.constant -2048144789 : i32
    %62 = vector.broadcast %c-2048144789_i32_20 : i32 to vector<16x128xi32>
    %63 = arith.muli %61, %62 : vector<16x128xi32>
    %c13_i32_21 = arith.constant 13 : i32
    %64 = vector.broadcast %c13_i32_21 : i32 to vector<16x128xi32>
    %65 = arith.shrui %63, %64 : vector<16x128xi32>
    %66 = arith.xori %63, %65 : vector<16x128xi32>
    %c-1028477387_i32_22 = arith.constant -1028477387 : i32
    %67 = vector.broadcast %c-1028477387_i32_22 : i32 to vector<16x128xi32>
    %68 = arith.muli %66, %67 : vector<16x128xi32>
    %c16_i32_23 = arith.constant 16 : i32
    %69 = vector.broadcast %c16_i32_23 : i32 to vector<16x128xi32>
    %70 = arith.shrui %68, %69 : vector<16x128xi32>
    %71 = arith.xori %68, %70 : vector<16x128xi32>
    %c429496730_i32_24 = arith.constant 429496730 : i32
    %72 = vector.broadcast %c429496730_i32_24 : i32 to vector<16x128xi32>
    %73 = arith.cmpi uge, %71, %72 : vector<16x128xi32>
    %cst_25 = arith.constant 0.000000e+00 : f32
    %74 = vector.broadcast %cst_25 : f32 to vector<16x128xf32>
    %75 = arith.select %73, %45, %74 : vector<16x128xi1>, vector<16x128xf32>
    %c0_26 = arith.constant 0 : index
    %c0_27 = arith.constant 0 : index
    %76 = vector.load %arg7[%c0_26, %c0_27] : memref<128x128xf32, #tpu.memory_space<vmem>>, vector<128x128xf32>
    %c0_28 = arith.constant 0 : index
    %c0_29 = arith.constant 0 : index
    %77 = vector.load %arg8[%c0_28, %c0_29] : memref<1x128xf32, #tpu.memory_space<vmem>>, vector<1x128xf32>
    %cst_30 = arith.constant dense<0.000000e+00> : vector<16x128xf32>
    %78 = tpu.matmul %75, %76, %cst_30 {dimension_numbers = #tpu.dot_dimension_numbers<[1], [0], [0], [1], [0, 0, 1, 1], [], []>} : vector<16x128xf32>, vector<128x128xf32>, vector<16x128xf32> -> vector<16x128xf32>
    %79 = vector.broadcast %77 : vector<1x128xf32> to vector<16x128xf32>
    %80 = arith.addf %78, %79 : vector<16x128xf32>
    %c0_31 = arith.constant 0 : index
    %c0_32 = arith.constant 0 : index
    %81 = vector.load %arg9[%c0_31, %c0_32] : memref<16x128xf32, #tpu.memory_space<vmem>>, vector<16x128xf32>
    tpu.vector_store %arg9[%c0_31, %c0_32], %80 {strides = array<i32>} : memref<16x128xf32, #tpu.memory_space<vmem>>, vector<16x128xf32>,
    return
  }
  func.func @transform_0(%arg0: i32, %arg1: memref<3xi32, #tpu.memory_space<smem>>) -> (i32, i32) {
    %c0_i32 = arith.constant 0 : i32
    %c0_i32_0 = arith.constant 0 : i32
    return %arg0, %c0_i32 : i32, i32
  }
  func.func @transform_1(%arg0: i32, %arg1: memref<3xi32, #tpu.memory_space<smem>>) -> (i32, i32) {
    %c0_i32 = arith.constant 0 : i32
    %c0_i32_0 = arith.constant 0 : i32
    %c0_i32_1 = arith.constant 0 : i32
    return %c0_i32, %c0_i32_0 : i32, i32
  }
  func.func @transform_2(%arg0: i32, %arg1: memref<3xi32, #tpu.memory_space<smem>>) -> (i32, i32) {
    %c0_i32 = arith.constant 0 : i32
    %c0_i32_0 = arith.constant 0 : i32
    %c0_i32_1 = arith.constant 0 : i32
    return %c0_i32, %c0_i32_0 : i32, i32
  }
  func.func @transform_3(%arg0: i32, %arg1: memref<3xi32, #tpu.memory_space<smem>>) -> (i32, i32) {
    %c0_i32 = arith.constant 0 : i32
    %c0_i32_0 = arith.constant 0 : i32
    %c0_i32_1 = arith.constant 0 : i32
    return %c0_i32, %c0_i32_0 : i32, i32
  }
  func.func @transform_4(%arg0: i32, %arg1: memref<3xi32, #tpu.memory_space<smem>>) -> (i32, i32) {
    %c0_i32 = arith.constant 0 : i32
    %c0_i32_0 = arith.constant 0 : i32
    %c0_i32_1 = arith.constant 0 : i32
    return %c0_i32, %c0_i32_0 : i32, i32
  }
  func.func @transform_5(%arg0: i32, %arg1: memref<3xi32, #tpu.memory_space<smem>>) -> (i32, i32) {
    %c0_i32 = arith.constant 0 : i32
    %c0_i32_0 = arith.constant 0 : i32
    %c0_i32_1 = arith.constant 0 : i32
    return %c0_i32, %c0_i32_0 : i32, i32
  }
  func.func @transform_6(%arg0: i32, %arg1: memref<3xi32, #tpu.memory_space<smem>>) -> (i32, i32) {
    %c0_i32 = arith.constant 0 : i32
    %c0_i32_0 = arith.constant 0 : i32
    %c0_i32_1 = arith.constant 0 : i32
    return %c0_i32, %c0_i32_0 : i32, i32
  }
  func.func @transform_7(%arg0: i32, %arg1: memref<3xi32, #tpu.memory_space<smem>>) -> (i32, i32) {
    %c0_i32 = arith.constant 0 : i32
    %c0_i32_0 = arith.constant 0 : i32
    return %arg0, %c0_i32 : i32, i32
  }
}

</mosaic_0001>

<bundles_post_ra>
// kernel: _mlp_forward.1
= control target key start
LH: loop header
LB: loop body
LE: loop exit
PB: predicated region body
PF: predicated region fallthrough
CT: control target
= control target key end

     0   :  { %s926_s0 = inlined_call_operand.vmem [shape: s32[3], index: 0, kind: input, shape index: {}]   ;;  %s927_s1 = inlined_call_operand.vmem [shape: f32[16,128], index: 1, kind: input, shape index: {}]   ;;  %s928_s2 = inlined_call_operand.hbm [shape: f32[128,128], index: 2, kind: input, shape index: {}]   ;;  %s929_s3 = inlined_call_operand.vmem [shape: f32[1,128], index: 3, kind: input, shape index: {}]   ;;  %s930_s4 = inlined_call_operand.hbm [shape: f32[128,128], index: 4, kind: input, shape index: {}]   ;;  %s931_s5 = inlined_call_operand.vmem [shape: f32[1,128], index: 5, kind: input, shape index: {}]   ;;  %s932_s6 = inlined_call_operand.hbm [shape: f32[128,128], index: 6, kind: input, shape index: {}]   ;;  %s933_s7 = inlined_call_operand.vmem [shape: f32[1,128], index: 7, kind: input, shape index: {}]   ;;  %s934_s8 = inlined_call_operand.vmem [shape: f32[16,128], index: 8, kind: output, shape index: {}]  }
   0x1   :  { %s13_s29 = sshll.u32 %s926_s0, 4  ;;  %s14_s29 = int_to_ptr.vmem [resolvable:$true] %s13_s29 }
   0x2   :  { %s715_s30 = scalar_lea.vmem %s14_s29, 16  ;;  %p720_p1 = scmp.lt.s32.totalorder %s14_s29, %s14_s29 }
   0x3   :  { %p716_p0 = scmp.ne.s32.totalorder %s14_s29, %s715_s30  ;;  %p721_p2 = scmp.lt.s32.totalorder %s715_s30, %s715_s30 }
   0x5   :  { %p722_p3 = por %p721_p2, %p720_p1 }
   0x7   :  { %p723_p4 = pnand %p722_p3, %p716_p0 }
   0x9   :  { %726 = shalt.err (!%p723_p4)  }
   0xa   :  { %s799_s9 = smov [#allocation3]  }
   0xb   :  { %16 = dma.vmem_to_smem %s14_s29, 16, %s799_s9, [#allocation2] }
   0xc   :  { %793 = dma.done.wait [#allocation2], 16 }
   0xd   :  { %794 = vsyncadd [#allocation2], 4294967280 }
   0xe   :  { %18 = sfence }
   0xf   :  { %19 = vsyncpa [#allocation5], 0 }
  0x10   :  { %20 = vsyncpa [#allocation7], 0  ;;  %s800_s10 = smov [#allocation6]   ;;  %s801_s12 = smov [#allocation4]  }
  0x11   :  { %s42_s11 = sshll.u32 %s800_s10, 4  ;;  %s28_s13 = sshll.u32 %s801_s12, 4  ;;  %s43_s11 = int_to_ptr.vmem [resolvable:$true] %s42_s11  ;;  %s853_s13 = int_to_ptr.vmem [resolvable:$true] %s28_s13 }
  0x12   :  { %s727_s15 = scalar_lea.hbm %s930_s4, 2048 }
  0x13   :  { %p728_p5 = scmp.ne.s32.totalorder %s930_s4, %s727_s15  ;;  %p731_p6 = scmp.lt.u32.totalorder %s727_s15, %s930_s4 }
  0x15   :  { %p733_p7 = pnand %p731_p6, %p728_p5 }
  0x17   :  { %736 = shalt.err (!%p733_p7)
}
  0x18   :  { %s737_s20 = scalar_lea.vmem %s43_s11, 2048  ;;  %p742_p9 = scmp.lt.s32.totalorder %s43_s11, %s43_s11 }
  0x19   :  { %p738_p8 = scmp.ne.s32.totalorder %s43_s11, %s737_s20  ;;  %p743_p10 = scmp.lt.s32.totalorder %s737_s20, %s737_s20 }
  0x1b   :  { %p744_p11 = por %p743_p10, %p742_p9 }
  0x1d   :  { %p745_p12 = pnand %p744_p11, %p738_p8 }
  0x1f   :  { %748 = shalt.err (!%p745_p12)
}
  0x20   :  { %s802_s21 = smov 128   ;;  %s803_s22 = smov 8  }
  0x21   :  { %48 = dma.hbm_to_vmem [thread:$0]  %s930_s4, 2048, %s43_s11, [#allocation7], %s802_s21, %s802_s21, %s803_s22  }
  0x22   :  { %s749_s27 = scalar_lea.hbm %s928_s2, 2048 }
  0x23   :  { %p750_p13 = scmp.ne.s32.totalorder %s928_s2, %s749_s27  ;;  %p753_p0 = scmp.lt.u32.totalorder %s749_s27, %s928_s2 }
  0x25   :  { %p755_p1 = pnand %p753_p0, %p750_p13 }
  0x27   :  { %758 = shalt.err (!%p755_p1)
}
  0x28   :  { %s759_s10 = scalar_lea.vmem %s853_s13, 2048  ;;  %p764_p3 = scmp.lt.s32.totalorder %s853_s13, %s853_s13 }
  0x29   :  { %p760_p2 = scmp.ne.s32.totalorder %s853_s13, %s759_s10  ;;  %p765_p4 = scmp.lt.s32.totalorder %s759_s10, %s759_s10 }
  0x2b   :  { %p766_p5 = por %p765_p4, %p764_p3 }
  0x2d   :  { %p767_p6 = pnand %p766_p5, %p760_p2 }
  0x2f   :  { %770 = shalt.err (!%p767_p6)
}
  0x30   :  { %34 = dma.hbm_to_vmem [thread:$0]  %s928_s2, 2048, %s853_s13, [#allocation5], %s802_s21, %s802_s21, %s803_s22  }
  0x31   :  { %s804_s12 = smov [#allocation8]   ;;  %s771_s16 = scalar_lea.hbm %s932_s6, 2048 }
  0x32   :  { %s56_s0 = sshll.u32 %s804_s12, 4  ;;  %p772_p7 = scmp.ne.s32.totalorder %s932_s6, %s771_s16  ;;  %s57_s0 = int_to_ptr.vmem [resolvable:$true] %s56_s0 }
  0x33   :  { %p775_p8 = scmp.lt.u32.totalorder %s771_s16, %s932_s6 }
  0x35   :  { %p777_p9 = pnand %p775_p8, %p772_p7 }
  0x37   :  { %780 = shalt.err (!%p777_p9)
}
  0x38   :  { %s781_s23 = scalar_lea.vmem %s57_s0, 2048  ;;  %p786_p11 = scmp.lt.s32.totalorder %s57_s0, %s57_s0 }
  0x39   :  { %p782_p10 = scmp.ne.s32.totalorder %s57_s0, %s781_s23  ;;  %p787_p12 = scmp.lt.s32.totalorder %s781_s23, %s781_s23 }
  0x3b   :  { %p788_p13 = por %p787_p12, %p786_p11 }
  0x3d   :  { %p789_p0 = pnand %p788_p13, %p782_p10 }
  0x3f   :  { %792 = shalt.err (!%p789_p0)
}
  0x40   :  { %62 = dma.hbm_to_vmem [thread:$0]  %s932_s6, 2048, %s57_s0, [#allocation7], %s802_s21, %s802_s21, %s803_s22  }
  0x41   :  { %795 = dma.done.wait [#allocation5], 2048  }
  0x42   :  { %796 = vsyncadd [#allocation5], 4294965248 }
  0x43   :  { %797 = dma.done.wait [#allocation7], 4096  }
  0x44   :  { %798 = vsyncadd [#allocation7], 4294963200  ;;  %v77_v0 = vld [vmem:[#allocation4] sm:$0xff]  ;;  %v78_v1 = vld [vmem:[#allocation4 + $0x8] sm:$0xff]  ;;  %s450_s28 = sld [smem:[#allocation3 + $0x1]] }
  0x45   :  { %v79_v2 = vld [vmem:[#allocation4 + $0x10] sm:$0xff]  ;;  %v613_v3 = vpack.c.bf16 %v78_v1, %v77_v0  ;;  %v80_v4 = vld [vmem:[#allocation4 + $0x18] sm:$0xff]  ;;  %v81_v6 = vld [vmem:[#allocation4 + $0x20] sm:$0xff] }
  0x46   :  { %v617_v5 = vpack.c.bf16 %v80_v4, %v79_v2  ;;  %v82_v7 = vld [vmem:[#allocation4 + $0x28] sm:$0xff]  ;;  %v83_v9 = vld [vmem:[#allocation4 + $0x30] sm:$0xff]  ;;  %v84_v10 = vld [vmem:[#allocation4 + $0x38] sm:$0xff] }
  0x47   :  { %614 = vmatprep.subr.bf16.mxu0 %v613_v3  ;;  %v621_v8 = vpack.c.bf16 %v82_v7, %v81_v6  ;;  %v74_v11 = vld [vmem:[%s927_s1] sm:$0xff]  ;;  %v216_v13 = vld [vmem:[#allocation6 + $0x8] sm:$0xff]  ;;  %v217_v14 = vld [vmem:[#allocation6 + $0x10] sm:$0xff]  ;;  %v625_v20 = vpack.c.bf16 %v84_v10, %v83_v9  ;;  %v177_v7 = vlaneseq }
  0x48   :  { %616 = vmatpush3.bf16.msra.mxu0 %v613_v3  ;;  %540 = vmatprep.mubr.f32.mxu0 %v74_v11  ;;  %v215_v12 = vld [vmem:[#allocation6] sm:$0xff]  ;;  %v218_v16 = vld [vmem:[#allocation6 + $0x18] sm:$0xff]  ;;  %v220_v19 = vld [vmem:[#allocation6 + $0x28] sm:$0xff] }
  0x49   :  { %618 = vmatprep.subr.bf16.mxu0 %v617_v5  ;;  %v645_v15 = vpack.c.bf16 %v216_v13, %v215_v12  ;;  %v649_v17 = vpack.c.bf16 %v218_v16, %v217_v14  ;;  %v219_v18 = vld [vmem:[#allocation6 + $0x20] sm:$0xff]  ;;  %v86_v22 = vld [vmem:[#allocation4 + $0x48] sm:$0xff]  ;;  %v221_v24 = vld [vmem:[#allocation6 + $0x30] sm:$0xff]  ;;  %v184_v9 = vand.u32 127, %v177_v7 }
  0x4a   :  { %v85_v21 = vld [vmem:[#allocation4 + $0x40] sm:$0xff]  ;;  %v653_v23 = vpack.c.bf16 %v220_v19, %v219_v18  ;;  %v222_v25 = vld [vmem:[#allocation6 + $0x38] sm:$0xff]  ;;  %v87_v27 = vld [vmem:[#allocation4 + $0x50] sm:$0xff]  ;;  %s316_s29 = smul.u32 3266489917, %s450_s28 }
  0x4b   :  { %646 = vmatprep.subr.bf16.mxu1 %v645_v15  ;;  %v629_v26 = vpack.c.bf16 %v86_v22, %v85_v21  ;;  %v88_v28 = vld [vmem:[#allocation4 + $0x58] sm:$0xff]  ;;  %v657_v29 = vpack.c.bf16 %v222_v25, %v221_v24  ;;  %v223_v30 = vld [vmem:[#allocation6 + $0x40] sm:$0xff]  ;;  %v224_v31 = vld [vmem:[#allocation6 + $0x48] sm:$0xff]  ;;  %v188_v12 = vmul.u32 2246822519, %v184_v9 }
  0x4c   :  { %620 = vmatpush3.bf16.msra.mxu0 %v617_v5  ;;  %648 = vmatpush3.bf16.msra.mxu1 %v645_v15  ;;  %v633_v32 = vpack.c.bf16 %v88_v28, %v87_v27  ;;  %v89_v33 = vld [vmem:[#allocation4 + $0x60] sm:$0xff]  ;;  %v90_v34 = vld [vmem:[#allocation4 + $0x68] sm:$0xff]  ;;  %v661_v35 = vpack.c.bf16 %v224_v31, %v223_v30  ;;  %v225_v36 = vld [vmem:[#allocation6 + $0x50] sm:$0xff] }
  0x4d   :  { %622 = vmatprep.subr.bf16.mxu0 %v621_v8  ;;  %650 = vmatprep.subr.bf16.mxu1 %v649_v17  ;;  %v226_v37 = vld [vmem:[#allocation6 + $0x58] sm:$0xff]  ;;  %v637_v38 = vpack.c.bf16 %v90_v34, %v89_v33  ;;  %v91_v39 = vld [vmem:[#allocation4 + $0x70] sm:$0xff]  ;;  %v227_v42 = vld [vmem:[#allocation6 + $0x60] sm:$0xff] }
  0x4e   :  { %v92_v40 = vld [vmem:[#allocation4 + $0x78] sm:$0xff]  ;;  %v665_v41 = vpack.c.bf16 %v226_v37, %v225_v36  ;;  %v228_v43 = vld [vmem:[#allocation6 + $0x68] sm:$0xff]  ;;  %v229_v47 = vld [vmem:[#allocation6 + $0x70] sm:$0xff] }
  0x4f   :  { %v641_v44 = vpack.c.bf16 %v92_v40, %v91_v39  ;;  %v669_v45 = vpack.c.bf16 %v228_v43, %v227_v42  ;;  %v75_v46 = vld [vmem:[%s927_s1 + $0x8] sm:$0xff]  ;;  %v230_v48 = vld [vmem:[#allocation6 + $0x78] sm:$0xff]  ;;  %v340_v50 = vld [vmem:[#allocation8] sm:$0xff]  ;;  %s185_s1 = sld [smem:[#allocation3]] }
  0x50   :  { %624 = vmatpush3.bf16.msra.mxu0 %v621_v8  ;;  %652 = vmatpush3.bf16.msra.mxu1 %v649_v17  ;;  %v673_v49 = vpack.c.bf16 %v230_v48, %v229_v47  ;;  %v341_v51 = vld [vmem:[#allocation8 + $0x8] sm:$0xff]  ;;  %v342_v52 = vld [vmem:[#allocation8 + $0x10] sm:$0xff]  ;;  %v343_v54 = vld [vmem:[#allocation8 + $0x18] sm:$0xff]  ;;  %v178_v8 = vshrl.u32 %v177_v7, 7 }
  0x51   :  { %626 = vmatprep.subr.bf16.mxu0 %v625_v20  ;;  %654 = vmatprep.subr.bf16.mxu1 %v653_v23  ;;  %v677_v53 = vpack.c.bf16 %v341_v51, %v340_v50  ;;  %v681_v55 = vpack.c.bf16 %v343_v54, %v342_v52  ;;  %v344_v56 = vld [vmem:[#allocation8 + $0x20] sm:$0xff]  ;;  %v345_v57 = vld [vmem:[#allocation8 + $0x28] sm:$0xff]  ;;  %v346_v59 = vld [vmem:[#allocation8 + $0x30] sm:$0xff] }
  0x52   :  { %v685_v58 = vpack.c.bf16 %v345_v57, %v344_v56  ;;  %v347_v60 = vld [vmem:[#allocation8 + $0x38] sm:$0xff]  ;;  %v348_v62 = vld [vmem:[#allocation8 + $0x40] sm:$0xff]  ;;  %v349_v63 = vld [vmem:[#allocation8 + $0x48] sm:$0xff]  ;;  %v179_v10 = vadd.s32 8, %v178_v8  ;;  %v186_v11 = vmul.u32 2654435761, %v178_v8 }
  0x53   :  { %v689_v61 = vpack.c.bf16 %v347_v60, %v346_v59  ;;  %v693_v0 = vpack.c.bf16 %v349_v63, %v348_v62  ;;  %v350_v1 = vld [vmem:[#allocation8 + $0x50] sm:$0xff]  ;;  %v351_v2 = vld [vmem:[#allocation8 + $0x58] sm:$0xff]  ;;  %v352_v4 = vld [vmem:[#allocation8 + $0x60] sm:$0xff] }
  0x54   :  { %628 = vmatpush3.bf16.msra.mxu0 %v625_v20  ;;  %656 = vmatpush3.bf16.msra.mxu1 %v653_v23  ;;  %v697_v3 = vpack.c.bf16 %v351_v2, %v350_v1  ;;  %v353_v5 = vld [vmem:[#allocation8 + $0x68] sm:$0xff]  ;;  %v187_v13 = vmul.u32 2654435761, %v179_v10  ;;  %v189_v14 = vxor.u32 %v188_v12, %v186_v11  ;;  %v446_v33 = vld [vmem:[%s929_s3] ss:$0 sm:$0xff]  ;;  %v354_v42 = vld [vmem:[#allocation8 + $0x70] sm:$0xff] }
  0x55   :  { %630 = vmatprep.subr.bf16.mxu0 %v629_v26  ;;  %658 = vmatprep.subr.bf16.mxu1 %v657_v29  ;;  %v701_v6 = vpack.c.bf16 %v353_v5, %v352_v4  ;;  %s191_s25 = smul.u32 3266489917, %s185_s1  ;;  %v355_v43 = vld [vmem:[#allocation8 + $0x78] sm:$0xff]  ;;  %v447_v62 = vld [vmem:[%s931_s5] ss:$0 sm:$0xff] }
  0x56   :  { %v190_v15 = vxor.u32 %v188_v12, %v187_v13  ;;  %v451_v7 = vld [vmem:[%s933_s7] ss:$0 sm:$0xff] }
  0x57   :  { %v192_v16 = vstv %s191_s25 }
  0x58   :  { %632 = vmatpush3.bf16.msra.mxu0 %v629_v26  ;;  %660 = vmatpush3.bf16.msra.mxu1 %v657_v29  ;;  %v193_v17 = vxor.u32 %v192_v16, %v189_v14  ;;  %v194_v18 = vxor.u32 %v192_v16, %v190_v15 }
  0x59   :  { %634 = vmatprep.subr.bf16.mxu0 %v633_v32  ;;  %662 = vmatprep.subr.bf16.mxu1 %v661_v35 }
  0x5a   :  { %v195_v19 = vshrl.u32 %v193_v17, 16  ;;  %v196_v20 = vshrl.u32 %v194_v18, 16 }
  0x5c   :  { %636 = vmatpush3.bf16.msra.mxu0 %v633_v32  ;;  %664 = vmatpush3.bf16.msra.mxu1 %v661_v35  ;;  %v197_v21 = vxor.u32 %v195_v19, %v193_v17  ;;  %v198_v22 = vxor.u32 %v196_v20, %v194_v18 }
  0x5d   :  { %638 = vmatprep.subr.bf16.mxu0 %v637_v38  ;;  %666 = vmatprep.subr.bf16.mxu1 %v665_v41 }
  0x5e   :  { %v199_v23 = vmul.u32 2246822507, %v197_v21  ;;  %v200_v24 = vmul.u32 2246822507, %v198_v22 }
  0x60   :  { %640 = vmatpush3.bf16.msra.mxu0 %v637_v38  ;;  %668 = vmatpush3.bf16.msra.mxu1 %v665_v41  ;;  %v201_v25 = vshrl.u32 %v199_v23, 13  ;;  %v202_v26 = vshrl.u32 %v200_v24, 13 }
  0x61   :  { %642 = vmatprep.subr.bf16.mxu0 %v641_v44  ;;  %670 = vmatprep.subr.bf16.mxu1 %v669_v45 }
  0x62   :  { %v203_v27 = vxor.u32 %v201_v25, %v199_v23  ;;  %v204_v28 = vxor.u32 %v202_v26, %v200_v24 }
  0x64   :  { %644 = vmatpush3.bf16.msra.mxu0 %v641_v44  ;;  %672 = vmatpush3.bf16.msra.mxu1 %v669_v45  ;;  %v205_v29 = vmul.u32 3266489909, %v203_v27  ;;  %v206_v30 = vmul.u32 3266489909, %v204_v28  ;;  %v705_v44 = vpack.c.bf16 %v355_v43, %v354_v42  ;;  %v317_v45 = vstv %s316_s29 }
  0x65   :  { %674 = vmatprep.subr.bf16.mxu1 %v673_v49  ;;  %678 = vmatprep.subr.bf16.mxu0 %v677_v53  ;;  %v319_v47 = vxor.u32 %v317_v45, %v190_v15 }
  0x66   :  { %v207_v31 = vshrl.u32 %v205_v29, 16  ;;  %v208_v32 = vshrl.u32 %v206_v30, 16 }
  0x67   :  { %541 = vmatmul.mubr.f32.vlgmr.msra.gmra.mrb[0].mxu0 %v75_v46  ;;  %v318_v46 = vxor.u32 %v317_v45, %v189_v14 }
  0x68   :  { %676 = vmatpush3.bf16.msra.mxu1 %v673_v49  ;;  %680 = vmatpush3.bf16.msra.mxu0 %v677_v53  ;;  %v209_v34 = vxor.u32 %v207_v31, %v205_v29  ;;  %v210_v36 = vxor.u32 %v208_v32, %v206_v30  ;;  %v321_v49 = vshrl.u32 %v319_v47, 16 }
  0x69   :  { %682 = vmatprep.subr.bf16.mxu0 %v681_v55  ;;  %v320_v48 = vshrl.u32 %v318_v46, 16 }
  0x6a   :  { %vm211_vm0 = vcmp.ge.u32.totalorder %v209_v34, 429496730  ;;  %vm212_vm1 = vcmp.ge.u32.totalorder %v210_v36, 429496730  ;;  %v323_v51 = vxor.u32 %v321_v49, %v319_v47 }
  0x6b   :  { %v322_v50 = vxor.u32 %v320_v48, %v318_v46 }
  0x6c   :  { %684 = vmatpush3.bf16.msra.mxu0 %v681_v55  ;;  %v325_v53 = vmul.u32 2246822507, %v323_v51 }
  0x6d   :  { %686 = vmatprep.subr.bf16.mxu0 %v685_v58  ;;  %v324_v52 = vmul.u32 2246822507, %v322_v50 }
  0x6e   :  { %v327_v55 = vshrl.u32 %v325_v53, 13 }
  0x6f   :  { %v326_v54 = vshrl.u32 %v324_v52, 13 }
  0x70   :  { %688 = vmatpush3.bf16.msra.mxu0 %v685_v58  ;;  %v329_v57 = vxor.u32 %v327_v55, %v325_v53 }
  0x71   :  { %690 = vmatprep.subr.bf16.mxu0 %v689_v61  ;;  %v328_v56 = vxor.u32 %v326_v54, %v324_v52 }
  0x72   :  { %v331_v59 = vmul.u32 3266489909, %v329_v57 }
  0x73   :  { %v330_v58 = vmul.u32 3266489909, %v328_v56 }
  0x74   :  { %692 = vmatpush3.bf16.msra.mxu0 %v689_v61  ;;  %v333_v61 = vshrl.u32 %v331_v59, 16 }
  0x75   :  { %694 = vmatprep.subr.bf16.mxu0 %v693_v0  ;;  %v332_v60 = vshrl.u32 %v330_v58, 16 }
  0x76   :  { %v335_v1 = vxor.u32 %v333_v61, %v331_v59 }
  0x77   :  { %v334_v63 = vxor.u32 %v332_v60, %v330_v58 }
  0x78   :  { %696 = vmatpush3.bf16.msra.mxu0 %v693_v0  ;;  %vm337_vm3 = vcmp.ge.u32.totalorder %v335_v1, 429496730 }
  0x79   :  { %698 = vmatprep.subr.bf16.mxu0 %v697_v3  ;;  %vm336_vm2 = vcmp.ge.u32.totalorder %v334_v63, 429496730 }
  0x7c   :  { %700 = vmatpush3.bf16.msra.mxu0 %v697_v3 }
  0x7d   :  { %702 = vmatprep.subr.bf16.mxu0 %v701_v6 }
  0x80   :  { %704 = vmatpush3.bf16.msra.mxu0 %v701_v6 }
  0x81   :  { %706 = vmatprep.subr.bf16.mxu0 %v705_v44 }
  0x84   :  { %708 = vmatpush3.bf16.msra.mxu0 %v705_v44 }
 0x13a   :  { %v542_v35 = vpop.f32.mrb[0].mxu0 }
 0x13b   :  { %v172_v37 = vadd.f32 %v542_v35, %v446_v33  ;;  %v166_v38 = vpop.f32.mrb[1].mxu0 }
 0x13c   :  { %v167_v39 = vadd.f32 %v446_v33, %v166_v38 }
 0x13d   :  { %v176_v41 = vmax.f32 %v172_v37, 0.0 }
 0x13e   :  { %v175_v40 = vmax.f32 %v167_v39, 0.0 }
 0x140   :  { %575 = vmatprep.mubr.msk.f32.mxu1 %vm211_vm0, %v175_v40 }
 0x141   :  { %576 = vmatmul.mubr.msk.f32.vlgmr.msra.gmra.mrb[0].mxu1 %vm212_vm1, %v176_v41 }
 0x214   :  { %v577_v0 = vpop.f32.mrb[0].mxu1 }
 0x215   :  { %v310_v2 = vadd.f32 %v577_v0, %v447_v62  ;;  %v304_v3 = vpop.f32.mrb[1].mxu1 }
 0x216   :  { %v305_v4 = vadd.f32 %v447_v62, %v304_v3 }
 0x217   :  { %v314_v6 = vmax.f32 %v310_v2, 0.0 }
 0x218   :  { %v313_v5 = vmax.f32 %v305_v4, 0.0 }
 0x21a   :  { %610 = vmatprep.mubr.msk.f32.mxu0 %vm336_vm2, %v313_v5 }
 0x21b   :  { %611 = vmatmul.mubr.msk.f32.vlgmr.msra.gmra.mrb[2].mxu0 %vm337_vm3, %v314_v6 }
 0x2ee   :  { %v612_v8 = vpop.f32.mrb[2].mxu0 }
 0x2ef   :  { %v435_v9 = vadd.f32 %v612_v8, %v451_v7  ;;  %v429_v10 = vpop.f32.mrb[3].mxu0 }
 0x2f0   :  { %v430_v11 = vadd.f32 %v451_v7, %v429_v10 }
 0x2f1   :  { %439 = vst [vmem:[%s934_s8 + $0x8] sm:$0xff] %v435_v9 }
 0x2f2   :  { %438 = vst [vmem:[%s934_s8] sm:$0xff] %v430_v11 }
 0x2f3   :  { %444 = vsyncpa [#allocation5], 1 }
 0x2f4   :  { %445 = vsyncpa [#allocation7], 1 }

</bundles_post_ra>
